<compile_context>
chip_gen: v7x
topology: tpu7x:2x2x1
jax: 0.10.0
libtpu: 0.0.40
codegen_flags: <defaults>
</compile_context>

<pallas_src>
import math

import jax
import jax.numpy as jnp
from jax.experimental import pallas as pl
from jax.experimental.pallas import tpu as pltpu


_MAX_LANE_TILE = 32 * 1024  # elements of N per grid step (multiple of 128)


def _round_up(x, m):
    return ((x + m - 1) // m) * m


def _stats_kernel(coord_ref, pred_ref, tgt_ref, out_ref):
    """Accumulate 7 per-image reductions into a lane-dense (Bt, 128) block.

    Lane layout of the output rows:
      0: sum(pred*tgt)  1: sum(pred)  2: sum(tgt)
      3: sum(x*pred)    4: sum(y*pred) 5: sum(x*tgt) 6: sum(y*tgt)
    """
    n = pl.program_id(1)

    p = jax.nn.sigmoid(pred_ref[...].astype(jnp.float32))   # (Bt, Nt)
    t = tgt_ref[...].astype(jnp.float32)                    # (Bt, Nt)

    x = coord_ref[0:1, :]                                    # (1, Nt)
    y = coord_ref[1:2, :]                                    # (1, Nt)

    inter = jnp.sum(p * t, axis=1, keepdims=True)            # (Bt, 1)
    psum = jnp.sum(p, axis=1, keepdims=True)
    tsum = jnp.sum(t, axis=1, keepdims=True)
    sxp = jnp.sum(x * p, axis=1, keepdims=True)
    syp = jnp.sum(y * p, axis=1, keepdims=True)
    sxt = jnp.sum(x * t, axis=1, keepdims=True)
    syt = jnp.sum(y * t, axis=1, keepdims=True)

    # Pack the 7 partial scalars per image into lanes 0..6 of one (Bt, 128)
    # tile -> single vector accumulate + unmasked store per grid step.
    lane = jax.lax.broadcasted_iota(jnp.int32, out_ref.shape, 1)
    zero = jnp.zeros(out_ref.shape, jnp.float32)
    stats = (jnp.where(lane == 0, inter, zero)
             + jnp.where(lane == 1, psum, zero)
             + jnp.where(lane == 2, tsum, zero)
             + jnp.where(lane == 3, sxp, zero)
             + jnp.where(lane == 4, syp, zero)
             + jnp.where(lane == 5, sxt, zero)
             + jnp.where(lane == 6, syt, zero))

    @pl.when(n == 0)
    def _():
        out_ref[...] = jnp.zeros_like(out_ref)

    out_ref[...] += stats


def _per_image_stats(pred_log, target):
    """Returns (B, 7) f32 per-image stats (see lane layout above)."""
    B, C, H, W = pred_log.shape
    N = C * H * W
    hw = H * W

    pred2 = pred_log.reshape(B, N)
    tgt2 = target.reshape(B, N)

    bt = min(B, 8)
    b_pad = _round_up(B, bt)
    n_tile = min(_round_up(N, 128), _MAX_LANE_TILE)
    n_pad = _round_up(N, n_tile)

    if (b_pad, n_pad) != (B, N):
        # Pad pred with the most negative finite value (sigmoid -> exactly 0)
        # and target with 0, so padded lanes/rows contribute nothing.
        neg = jnp.finfo(pred2.dtype).min
        pred2 = jnp.pad(pred2, ((0, b_pad - B), (0, n_pad - N)),
                        constant_values=neg)
        tgt2 = jnp.pad(tgt2, ((0, b_pad - B), (0, n_pad - N)))

    # Normalized coordinate vectors over the flattened (C, H, W) index,
    # shared by all images: x = (i % W)/W, y = ((i % (H*W)) // W)/H.
    i = jnp.arange(n_pad, dtype=jnp.int32)
    rem = i % hw
    x_flat = (rem % W).astype(jnp.float32) * (1.0 / W)
    y_flat = (rem // W).astype(jnp.float32) * (1.0 / H)
    coords = jnp.stack([x_flat, y_flat], axis=0)             # (2, n_pad) f32

    grid = (b_pad // bt, n_pad // n_tile)

    stats = pl.pallas_call(
        _stats_kernel,
        out_shape=jax.ShapeDtypeStruct((b_pad, 128), jnp.float32),
        grid_spec=pltpu.PrefetchScalarGridSpec(
            num_scalar_prefetch=0,
            grid=grid,
            in_specs=[
                pl.BlockSpec((2, n_tile), lambda b, n: (0, n)),   # coords
                pl.BlockSpec((bt, n_tile), lambda b, n: (b, n)),  # pred logits
                pl.BlockSpec((bt, n_tile), lambda b, n: (b, n)),  # target
            ],
            out_specs=pl.BlockSpec((bt, 128), lambda b, n: (b, 0)),
        ),
        compiler_params=pltpu.CompilerParams(
            dimension_semantics=("parallel", "arbitrary")),
    )(coords, pred2, tgt2)

    return stats[:B, :7]


def slsiou_loss(pred_log, target, epoch, warm_epoch=5, with_shape=True):
    """Forward pass of SLSIoULoss (epoch / warm_epoch are static Python ints)."""
    B, C, H, W = pred_log.shape
    stats = _per_image_stats(pred_log, target)

    inter = stats[:, 0]
    psum = stats[:, 1]
    tsum = stats[:, 2]
    n_elem = jnp.float32(C * H * W)
    px = stats[:, 3] / n_elem
    py = stats[:, 4] / n_elem
    tx = stats[:, 5] / n_elem
    ty = stats[:, 6] / n_elem

    # ---- soft IoU with size-penalty alpha (smooth = 0.0, as in the module) ----
    # NOTE: with smooth = 0.0 this divides by zero when pred and target are both
    # empty, exactly mirroring the PyTorch reference semantics.
    smooth = 0.0
    dis = jnp.square((psum - tsum) / 2.0)
    alpha = (jnp.minimum(psum, tsum) + dis + smooth) / (
        jnp.maximum(psum, tsum) + dis + smooth)
    iou = (inter + smooth) / (psum + tsum - inter + smooth)

    # ---- LLoss (center angle + length loss), eps = 1e-8 ----
    eps = 1e-08
    angle_loss = (4.0 / (math.pi ** 2)) * jnp.square(
        jnp.arctan(py / (px + eps)) - jnp.arctan(ty / (tx + eps)))
    pred_len = jnp.sqrt(px * px + py * py + eps)
    tgt_len = jnp.sqrt(tx * tx + ty * ty + eps)
    length_loss = jnp.minimum(pred_len, tgt_len) / (
        jnp.maximum(pred_len, tgt_len) + eps)
    lloss = jnp.mean(1.0 - length_loss + angle_loss)

    if epoch > warm_epoch:
        siou = alpha * iou
        if with_shape:
            return 1.0 - jnp.mean(siou) + lloss
        return 1.0 - jnp.mean(siou)
    return 1.0 - jnp.mean(iou)


def _reference_loss(pred_log, target, epoch, warm_epoch=5, with_shape=True):
    """Pure-JAX reference mirroring the PyTorch code, for a sanity check."""
    B, C, H, W = pred_log.shape
    pred = jax.nn.sigmoid(pred_log.astype(jnp.float32))
    tgt = target.astype(jnp.float32)

    inter = jnp.sum(pred * tgt, axis=(1, 2, 3))
    psum = jnp.sum(pred, axis=(1, 2, 3))
    tsum = jnp.sum(tgt, axis=(1, 2, 3))
    dis = jnp.square((psum - tsum) / 2.0)
    alpha = (jnp.minimum(psum, tsum) + dis) / (jnp.maximum(psum, tsum) + dis)
    iou = inter / (psum + tsum - inter)

    x_idx = (jnp.arange(W, dtype=jnp.float32) / W)[None, None, :]
    y_idx = (jnp.arange(H, dtype=jnp.float32) / H)[None, :, None]
    eps = 1e-08
    px = jnp.mean(x_idx * pred, axis=(1, 2, 3))
    py = jnp.mean(y_idx * pred, axis=(1, 2, 3))
    tx = jnp.mean(x_idx * tgt, axis=(1, 2, 3))
    ty = jnp.mean(y_idx * tgt, axis=(1, 2, 3))
    angle = (4.0 / (math.pi ** 2)) * jnp.square(
        jnp.arctan(py / (px + eps)) - jnp.arctan(ty / (tx + eps)))
    plen = jnp.sqrt(px * px + py * py + eps)
    tlen = jnp.sqrt(tx * tx + ty * ty + eps)
    length = jnp.minimum(plen, tlen) / (jnp.maximum(plen, tlen) + eps)
    lloss = jnp.mean(1.0 - length + angle)

    if epoch > warm_epoch:
        siou = alpha * iou
        if with_shape:
            return 1.0 - jnp.mean(siou) + lloss
        return 1.0 - jnp.mean(siou)
    return 1.0 - jnp.mean(iou)


if __name__ == "__main__":
    # SLSIoULoss has no learnable parameters; only inputs are needed.
    B, C, H, W = 2, 4, 16, 16
    key = jax.random.PRNGKey(0)
    k1, k2 = jax.random.split(key)
    pred_log = jax.random.normal(k1, (B, C, H, W), dtype=jnp.float32)
    target = (jax.random.uniform(k2, (B, C, H, W)) > 0.5).astype(jnp.float32)

    epoch, warm_epoch = 10, 5  # exercises the alpha*IoU + LLoss branch

    loss = slsiou_loss(pred_log, target, epoch, warm_epoch, with_shape=True)
    loss = jax.block_until_ready(loss)

    ref = jax.block_until_ready(
        _reference_loss(pred_log, target, epoch, warm_epoch, with_shape=True))
    assert jnp.allclose(loss, ref, atol=1e-5, rtol=1e-5), (loss, ref)

    print("KERNEL_OK")
</pallas_src>

<mosaic_0001>
module attributes {stable_mosaic.version = 11 : i64} {
  func.func @_stats_kernel(%arg0: i32, %arg1: i32, %arg2: memref<2x1024xf32, #tpu.memory_space<vmem>>, %arg3: memref<2x1024xf32, #tpu.memory_space<vmem>>, %arg4: memref<2x1024xf32, #tpu.memory_space<vmem>>, %arg5: memref<2x128xf32, #tpu.memory_space<vmem>>) attributes {dimension_semantics = [#tpu.dimension_semantics<parallel>, #tpu.dimension_semantics<arbitrary>], iteration_bounds = array<i64: 1, 1>, scalar_prefetch = 0 : i64, scratch_operands = 0 : i64, tpu.core_type = #tpu.core_type<tc>, window_params = [{transform_indices = @transform_0, window_bounds = array<i64: 2, 1024>}, {transform_indices = @transform_1, window_bounds = array<i64: 2, 1024>}, {transform_indices = @transform_2, window_bounds = array<i64: 2, 1024>}, {transform_indices = @transform_3, window_bounds = array<i64: 2, 128>}]} {
    %c0 = arith.constant 0 : index
    %c0_0 = arith.constant 0 : index
    %0 = vector.load %arg3[%c0, %c0_0] : memref<2x1024xf32, #tpu.memory_space<vmem>>, vector<2x1024xf32>
    %1 = arith.negf %0 : vector<2x1024xf32>
    %2 = math.exp %1 : vector<2x1024xf32>
    %cst = arith.constant 1.000000e+00 : f32
    %3 = vector.broadcast %cst : f32 to vector<2x1024xf32>
    %4 = arith.addf %3, %2 : vector<2x1024xf32>
    %5 = arith.divf %3, %4 : vector<2x1024xf32>
    %c0_1 = arith.constant 0 : index
    %c0_2 = arith.constant 0 : index
    %6 = vector.load %arg4[%c0_1, %c0_2] : memref<2x1024xf32, #tpu.memory_space<vmem>>, vector<2x1024xf32>
    %c0_3 = arith.constant 0 : index
    %c0_4 = arith.constant 0 : index
    %7 = vector.load %arg2[%c0_3, %c0_4] : memref<2x1024xf32, #tpu.memory_space<vmem>>, vector<1x1024xf32>
    %c1 = arith.constant 1 : index
    %c0_5 = arith.constant 0 : index
    %8 = vector.load %arg2[%c1, %c0_5] : memref<2x1024xf32, #tpu.memory_space<vmem>>, vector<1x1024xf32>
    %9 = arith.mulf %5, %6 : vector<2x1024xf32>
    %cst_6 = arith.constant dense<0.000000e+00> : vector<2xf32>
    %10 = vector.multi_reduction <add>, %9, %cst_6 [1] : vector<2x1024xf32> to vector<2xf32>
    %11 = vector.shape_cast %10 : vector<2xf32> to vector<2x1xf32>
    %cst_7 = arith.constant dense<0.000000e+00> : vector<2xf32>
    %12 = vector.multi_reduction <add>, %5, %cst_7 [1] : vector<2x1024xf32> to vector<2xf32>
    %13 = vector.shape_cast %12 : vector<2xf32> to vector<2x1xf32>
    %cst_8 = arith.constant dense<0.000000e+00> : vector<2xf32>
    %14 = vector.multi_reduction <add>, %6, %cst_8 [1] : vector<2x1024xf32> to vector<2xf32>
    %15 = vector.shape_cast %14 : vector<2xf32> to vector<2x1xf32>
    %16 = vector.broadcast %7 : vector<1x1024xf32> to vector<2x1024xf32>
    %17 = arith.mulf %16, %5 : vector<2x1024xf32>
    %cst_9 = arith.constant dense<0.000000e+00> : vector<2xf32>
    %18 = vector.multi_reduction <add>, %17, %cst_9 [1] : vector<2x1024xf32> to vector<2xf32>
    %19 = vector.shape_cast %18 : vector<2xf32> to vector<2x1xf32>
    %20 = vector.broadcast %8 : vector<1x1024xf32> to vector<2x1024xf32>
    %21 = arith.mulf %20, %5 : vector<2x1024xf32>
    %cst_10 = arith.constant dense<0.000000e+00> : vector<2xf32>
    %22 = vector.multi_reduction <add>, %21, %cst_10 [1] : vector<2x1024xf32> to vector<2xf32>
    %23 = vector.shape_cast %22 : vector<2xf32> to vector<2x1xf32>
    %24 = vector.broadcast %7 : vector<1x1024xf32> to vector<2x1024xf32>
    %25 = arith.mulf %24, %6 : vector<2x1024xf32>
    %cst_11 = arith.constant dense<0.000000e+00> : vector<2xf32>
    %26 = vector.multi_reduction <add>, %25, %cst_11 [1] : vector<2x1024xf32> to vector<2xf32>
    %27 = vector.shape_cast %26 : vector<2xf32> to vector<2x1xf32>
    %28 = vector.broadcast %8 : vector<1x1024xf32> to vector<2x1024xf32>
    %29 = arith.mulf %28, %6 : vector<2x1024xf32>
    %cst_12 = arith.constant dense<0.000000e+00> : vector<2xf32>
    %30 = vector.multi_reduction <add>, %29, %cst_12 [1] : vector<2x1024xf32> to vector<2xf32>
    %31 = vector.shape_cast %30 : vector<2xf32> to vector<2x1xf32>
    %32 = tpu.iota {dimensions = array<i32: 1>} : vector<2x128xi32>
    %cst_13 = arith.constant 0.000000e+00 : f32
    %33 = vector.broadcast %cst_13 : f32 to vector<2x128xf32>
    %c0_i32 = arith.constant 0 : i32
    %34 = vector.broadcast %c0_i32 : i32 to vector<2x128xi32>
    %35 = arith.cmpi eq, %32, %34 : vector<2x128xi32>
    %36 = vector.shape_cast %11 : vector<2x1xf32> to vector<2x1xf32>
    %37 = vector.broadcast %36 : vector<2x1xf32> to vector<2x128xf32>
    %38 = arith.select %35, %37, %33 : vector<2x128xi1>, vector<2x128xf32>
    %c1_i32 = arith.constant 1 : i32
    %39 = vector.broadcast %c1_i32 : i32 to vector<2x128xi32>
    %40 = arith.cmpi eq, %32, %39 : vector<2x128xi32>
    %41 = vector.shape_cast %13 : vector<2x1xf32> to vector<2x1xf32>
    %42 = vector.broadcast %41 : vector<2x1xf32> to vector<2x128xf32>
    %43 = arith.select %40, %42, %33 : vector<2x128xi1>, vector<2x128xf32>
    %44 = arith.addf %38, %43 : vector<2x128xf32>
    %c2_i32 = arith.constant 2 : i32
    %45 = vector.broadcast %c2_i32 : i32 to vector<2x128xi32>
    %46 = arith.cmpi eq, %32, %45 : vector<2x128xi32>
    %47 = vector.shape_cast %15 : vector<2x1xf32> to vector<2x1xf32>
    %48 = vector.broadcast %47 : vector<2x1xf32> to vector<2x128xf32>
    %49 = arith.select %46, %48, %33 : vector<2x128xi1>, vector<2x128xf32>
    %50 = arith.addf %44, %49 : vector<2x128xf32>
    %c3_i32 = arith.constant 3 : i32
    %51 = vector.broadcast %c3_i32 : i32 to vector<2x128xi32>
    %52 = arith.cmpi eq, %32, %51 : vector<2x128xi32>
    %53 = vector.shape_cast %19 : vector<2x1xf32> to vector<2x1xf32>
    %54 = vector.broadcast %53 : vector<2x1xf32> to vector<2x128xf32>
    %55 = arith.select %52, %54, %33 : vector<2x128xi1>, vector<2x128xf32>
    %56 = arith.addf %50, %55 : vector<2x128xf32>
    %c4_i32 = arith.constant 4 : i32
    %57 = vector.broadcast %c4_i32 : i32 to vector<2x128xi32>
    %58 = arith.cmpi eq, %32, %57 : vector<2x128xi32>
    %59 = vector.shape_cast %23 : vector<2x1xf32> to vector<2x1xf32>
    %60 = vector.broadcast %59 : vector<2x1xf32> to vector<2x128xf32>
    %61 = arith.select %58, %60, %33 : vector<2x128xi1>, vector<2x128xf32>
    %62 = arith.addf %56, %61 : vector<2x128xf32>
    %c5_i32 = arith.constant 5 : i32
    %63 = vector.broadcast %c5_i32 : i32 to vector<2x128xi32>
    %64 = arith.cmpi eq, %32, %63 : vector<2x128xi32>
    %65 = vector.shape_cast %27 : vector<2x1xf32> to vector<2x1xf32>
    %66 = vector.broadcast %65 : vector<2x1xf32> to vector<2x128xf32>
    %67 = arith.select %64, %66, %33 : vector<2x128xi1>, vector<2x128xf32>
    %68 = arith.addf %62, %67 : vector<2x128xf32>
    %c6_i32 = arith.constant 6 : i32
    %69 = vector.broadcast %c6_i32 : i32 to vector<2x128xi32>
    %70 = arith.cmpi eq, %32, %69 : vector<2x128xi32>
    %71 = vector.shape_cast %31 : vector<2x1xf32> to vector<2x1xf32>
    %72 = vector.broadcast %71 : vector<2x1xf32> to vector<2x128xf32>
    %73 = arith.select %70, %72, %33 : vector<2x128xi1>, vector<2x128xf32>
    %74 = arith.addf %68, %73 : vector<2x128xf32>
    %c0_i32_14 = arith.constant 0 : i32
    %75 = arith.cmpi eq, %arg1, %c0_i32_14 : i32
    %76 = arith.extui %75 : i1 to i32
    %c0_i32_15 = arith.constant 0 : i32
    %77 = arith.cmpi ne, %76, %c0_i32_15 : i32
    scf.if %77 {
      %cst_20 = arith.constant 0.000000e+00 : f32
      %81 = vector.broadcast %cst_20 : f32 to vector<2x128xf32>
      %c0_21 = arith.constant 0 : index
      %c0_22 = arith.constant 0 : index
      %82 = vector.load %arg5[%c0_21, %c0_22] : memref<2x128xf32, #tpu.memory_space<vmem>>, vector<2x128xf32>
      tpu.vector_store %arg5[%c0_21, %c0_22], %81 {strides = array<i32>} : memref<2x128xf32, #tpu.memory_space<vmem>>, vector<2x128xf32>,
    } else {
    }
    %c0_16 = arith.constant 0 : index
    %c0_17 = arith.constant 0 : index
    %78 = vector.load %arg5[%c0_16, %c0_17] : memref<2x128xf32, #tpu.memory_space<vmem>>, vector<2x128xf32>
    %79 = arith.addf %78, %74 : vector<2x128xf32>
    %c0_18 = arith.constant 0 : index
    %c0_19 = arith.constant 0 : index
    %80 = vector.load %arg5[%c0_18, %c0_19] : memref<2x128xf32, #tpu.memory_space<vmem>>, vector<2x128xf32>
    tpu.vector_store %arg5[%c0_18, %c0_19], %79 {strides = array<i32>} : memref<2x128xf32, #tpu.memory_space<vmem>>, vector<2x128xf32>,
    return
  }
  func.func @transform_0(%arg0: i32, %arg1: i32) -> (i32, i32) {
    %c0_i32 = arith.constant 0 : i32
    %c0_i32_0 = arith.constant 0 : i32
    return %c0_i32, %arg1 : i32, i32
  }
  func.func @transform_1(%arg0: i32, %arg1: i32) -> (i32, i32) {
    %c0_i32 = arith.constant 0 : i32
    return %arg0, %arg1 : i32, i32
  }
  func.func @transform_2(%arg0: i32, %arg1: i32) -> (i32, i32) {
    %c0_i32 = arith.constant 0 : i32
    return %arg0, %arg1 : i32, i32
  }
  func.func @transform_3(%arg0: i32, %arg1: i32) -> (i32, i32) {
    %c0_i32 = arith.constant 0 : i32
    %c0_i32_0 = arith.constant 0 : i32
    return %arg0, %c0_i32 : i32, i32
  }
}

</mosaic_0001>

<bundles_post_ra>
// kernel: tpu_custom_call.1
= control target key start
LH: loop header
LB: loop body
LE: loop exit
PB: predicated region body
PF: predicated region fallthrough
CT: control target
= control target key end

     0   :  { %8 = vsyncpa [#allocation3], 0  ;;  %s908_s0 = inlined_call_operand.hbm [shape: f32[2,1024], index: 0, kind: input, shape index: {}]   ;;  %s909_s1 = inlined_call_operand.hbm [shape: f32[2,1024], index: 1, kind: input, shape index: {}]   ;;  %s910_s2 = inlined_call_operand.hbm [shape: f32[2,1024], index: 2, kind: input, shape index: {}]   ;;  %s911_s3 = inlined_call_operand.hbm [shape: f32[2,128], index: 3, kind: output, shape index: {}]  }
   0x1   :  { %9 = vsyncpa [#allocation6], 0 }
   0x2   :  { %10 = vsyncpa [#allocation4], 0  ;;  %s595_s12 = smov [#allocation5]   ;;  %s596_s14 = smov [#allocation2]  }
   0x3   :  { %s27_s13 = sshll.u32 %s595_s12, 4  ;;  %s17_s15 = sshll.u32 %s596_s14, 4  ;;  %s28_s13 = int_to_ptr.vmem [resolvable:$true] %s27_s13  ;;  %s18_s15 = int_to_ptr.vmem [resolvable:$true] %s17_s15 }
   0x4   :  { %s501_s18 = scalar_lea.hbm %s909_s1, 256 }
   0x5   :  { %p502_p0 = scmp.ne.s32.totalorder %s909_s1, %s501_s18  ;;  %p505_p1 = scmp.lt.u32.totalorder %s501_s18, %s909_s1 }
   0x7   :  { %p507_p2 = pnand %p505_p1, %p502_p0 }
   0x9   :  { %510 = shalt.err (!%p507_p2)
}
   0xa   :  { %s511_s23 = scalar_lea.vmem %s28_s13, 256  ;;  %p516_p4 = scmp.lt.s32.totalorder %s28_s13, %s28_s13 }
   0xb   :  { %p512_p3 = scmp.ne.s32.totalorder %s28_s13, %s511_s23  ;;  %p517_p5 = scmp.lt.s32.totalorder %s511_s23, %s511_s23 }
   0xd   :  { %p518_p6 = por %p517_p5, %p516_p4 }
   0xf   :  { %p519_p7 = pnand %p518_p6, %p512_p3 }
  0x11   :  { %522 = shalt.err (!%p519_p7)
}
  0x12   :  { %30 = dma.hbm_to_vmem [thread:$0]  %s909_s1, 256, %s28_s13, [#allocation6]  }
  0x13   :  { %s523_s28 = scalar_lea.hbm %s908_s0, 256 }
  0x14   :  { %p524_p8 = scmp.ne.s32.totalorder %s908_s0, %s523_s28  ;;  %p527_p9 = scmp.lt.u32.totalorder %s523_s28, %s908_s0 }
  0x16   :  { %p529_p10 = pnand %p527_p9, %p524_p8 }
  0x18   :  { %532 = shalt.err (!%p529_p10)
}
  0x19   :  { %s533_s6 = scalar_lea.vmem %s18_s15, 256  ;;  %p538_p12 = scmp.lt.s32.totalorder %s18_s15, %s18_s15 }
  0x1a   :  { %p534_p11 = scmp.ne.s32.totalorder %s18_s15, %s533_s6  ;;  %p539_p13 = scmp.lt.s32.totalorder %s533_s6, %s533_s6 }
  0x1c   :  { %p540_p0 = por %p539_p13, %p538_p12 }
  0x1e   :  { %p541_p1 = pnand %p540_p0, %p534_p11 }
  0x20   :  { %544 = shalt.err (!%p541_p1)
}
  0x21   :  { %20 = dma.hbm_to_vmem [thread:$0]  %s908_s0, 256, %s18_s15, [#allocation3]  }
  0x22   :  { %s597_s8 = smov [#allocation7]   ;;  %s545_s12 = scalar_lea.hbm %s910_s2, 256 }
  0x23   :  { %s37_s9 = sshll.u32 %s597_s8, 4  ;;  %p546_p2 = scmp.ne.s32.totalorder %s910_s2, %s545_s12  ;;  %s38_s9 = int_to_ptr.vmem [resolvable:$true] %s37_s9 }
  0x24   :  { %p549_p3 = scmp.lt.u32.totalorder %s545_s12, %s910_s2 }
  0x26   :  { %p551_p4 = pnand %p549_p3, %p546_p2 }
  0x28   :  { %554 = shalt.err (!%p551_p4)
}
  0x29   :  { %s555_s18 = scalar_lea.vmem %s38_s9, 256  ;;  %p560_p6 = scmp.lt.s32.totalorder %s38_s9, %s38_s9 }
  0x2a   :  { %p556_p5 = scmp.ne.s32.totalorder %s38_s9, %s555_s18  ;;  %p561_p7 = scmp.lt.s32.totalorder %s555_s18, %s555_s18 }
  0x2c   :  { %p562_p8 = por %p561_p7, %p560_p6 }
  0x2e   :  { %p563_p9 = pnand %p562_p8, %p556_p5 }
  0x30   :  { %566 = shalt.err (!%p563_p9)
}
  0x31   :  { %40 = dma.hbm_to_vmem [thread:$0]  %s910_s2, 256, %s38_s9, [#allocation6]  }
  0x32   :  { %589 = dma.done.wait [#allocation3], 256  }
  0x33   :  { %590 = vsyncadd [#allocation3], 4294967040 }
  0x34   :  { %591 = dma.done.wait [#allocation6], 512  }
  0x35   :  { %592 = vsyncadd [#allocation6], 4294966784  ;;  %v77_v0 = vlaneseq  ;;  %v598_v1 = vmov 0.0   ;;  %v599_v2 = vmov 1983009808   ;;  %v50_v7 = vld [vmem:[#allocation5] sm:$0xff] }
  0x36   :  { %463 = vst [vmem:[#allocation8] sm:$0x3] %v598_v1  ;;  %v75_v3 = vunpack.c.l.s4 %v599_v2  ;;  %v51_v8 = vld [vmem:[#allocation5 + $0x8] sm:$0xff]  ;;  %v663_v9 = vld [vmem:[#allocation7] sm:$0xff]  ;;  %v483_v10 = vmul.f32 -1.442695, %v50_v7 }
  0x37   :  { %v658_v4 = vshrl.u32 %v77_v0, 7  ;;  %v484_v11 = vmul.f32 -1.442695, %v51_v8  ;;  %v665_v12 = vld [vmem:[#allocation7 + $0x8] sm:$0xff]  ;;  %v196_v13 = vcombine.high %v663_v9, %v663_v9  ;;  %vm115_vm0 = vcmask 1041408   ;;  %s600_s2 = smov [#allocation8]  }
  0x38   :  { %v76_v5 = vunpack.c.0.s8 %v75_v3  ;;  %v213_v16 = vcombine.high %v665_v12, %v665_v12  ;;  %493 = vpow2.f32 %v483_v10  ;;  %v66_v26 = vld [vmem:[#allocation2] ss:$2 sm:$0xff]  ;;  %v68_v51 = vld [vmem:[#allocation2 + $0x1] ss:$2 sm:$0xff]  ;;  %s473_s19 = sshll.u32 %s600_s2, 4  ;;  %s474_s19 = int_to_ptr.vmem [resolvable:$true] %s473_s19 }
  0x39   :  { %495 = vpow2.f32 %v484_v11  ;;  %v258_v23 = vsub.s32 0, %v658_v4  ;;  %v262_v27 = vsub.s32 1, %v658_v4  ;;  %v266_v33 = vsub.s32 2, %v658_v4  ;;  %s567_s20 = scalar_lea.vmem %s474_s19, 32  ;;  %p572_p11 = scmp.lt.s32.totalorder %s474_s19, %s474_s19 }
  0x3a   :  { %v661_v6 = vsub.s32 %v76_v5, %v658_v4  ;;  %v270_v44 = vsub.s32 3, %v658_v4  ;;  %v274_v45 = vsub.s32 4, %v658_v4  ;;  %v278_v50 = vsub.s32 5, %v658_v4  ;;  %p568_p10 = scmp.ne.s32.totalorder %s474_s19, %s567_s20  ;;  %p573_p12 = scmp.lt.s32.totalorder %s567_s20, %s567_s20 }
  0x3b   :  { %v701_v32 = vrot.slane %v66_v26, %v258_v23  ;;  %v708_v36 = vrot.slane %v66_v26, %v262_v27  ;;  %v716_v43 = vrot.slane %v66_v26, %v266_v33  ;;  %v282_v57 = vsub.s32 6, %v658_v4 }
  0x3c   :  { %v203_v14 = vrot.slane %v663_v9, %v661_v6  ;;  %v673_v15 = vrot.slane %v665_v12, %v661_v6  ;;  %v678_v17 = vrot.slane %v196_v13, %v661_v6  ;;  %v690_v24 = vrot.slane %v213_v16, %v661_v6  ;;  %p574_p13 = por %p573_p12, %p572_p11 }
  0x3d   :  { %v286_v58 = vsub.s32 7, %v658_v4  ;;  %v729_v59 = vrot.slane %v66_v26, %v270_v44  ;;  %v731_v60 = vrot.slane %v68_v51, %v258_v23  ;;  %v733_v61 = vrot.slane %v68_v51, %v262_v27 }
  0x3e   :  { %v211_v18 = vcombine.high %v203_v14, %v203_v14  ;;  %v238_v19 = vsel %vm115_vm0, %v203_v14, 0.0  ;;  %v683_v20 = vcombine.high %v678_v17, %v678_v17  ;;  %v241_v22 = vsel %vm115_vm0, %v678_v17, 0.0  ;;  %p575_p0 = pnand %p574_p13, %p568_p10 }
  0x3f   :  { %v695_v28 = vcombine.high %v673_v15, %v673_v15  ;;  %v245_v31 = vsel %vm115_vm0, %v673_v15, 0.0  ;;  %v706_v34 = vcombine.high %v690_v24, %v690_v24  ;;  %v387_v38 = vmul.f32 %v701_v32, %v203_v14 }
  0x40   :  { %v239_v21 = vsel %vm115_vm0, %v211_v18, 0.0  ;;  %v243_v29 = vsel %vm115_vm0, %v683_v20, 0.0  ;;  %v388_v40 = vmul.f32 %v708_v36, %v211_v18  ;;  %v249_v42 = vsel %vm115_vm0, %v690_v24, 0.0 }
  0x41   :  { %v240_v25 = vadd.f32 %v239_v21, %v238_v19  ;;  %v247_v37 = vsel %vm115_vm0, %v695_v28, 0.0  ;;  %v251_v49 = vsel %vm115_vm0, %v706_v34, 0.0  ;;  %v389_v53 = vmul.f32 %v716_v43, %v678_v17 }
  0x42   :  { %v494_v41 = vpop.eup %493  ;;  %v395_v54 = vsel %vm115_vm0, %v387_v38, 0.0  ;;  %v396_v55 = vsel %vm115_vm0, %v388_v40, 0.0  ;;  %v390_v1 = vmul.f32 %v729_v59, %v683_v20  ;;  %v412_v3 = vmul.f32 %v731_v60, %v203_v14 }
  0x43   :  { %v242_v30 = vadd.f32 %v241_v22, %v240_v25  ;;  %v496_v46 = vpop.eup %495  ;;  %v58_v47 = vadd.f32 1.0, %v494_v41  ;;  %v397_v63 = vadd.f32 %v396_v55, %v395_v54  ;;  %v398_v2 = vsel %vm115_vm0, %v389_v53, 0.0 }
  0x44   :  { %v59_v52 = vadd.f32 1.0, %v496_v46  ;;  %v413_v5 = vmul.f32 %v733_v61, %v211_v18  ;;  %v740_v4 = vrot.slane %v66_v26, %v274_v45  ;;  %v742_v7 = vrot.slane %v66_v26, %v278_v50 }
  0x45   :  { %v244_v35 = vadd.f32 %v243_v29, %v242_v30  ;;  %497 = vrcp.f32 %v58_v47  ;;  %v744_v8 = vrot.slane %v66_v26, %v282_v57  ;;  %v746_v10 = vrot.slane %v66_v26, %v286_v58 }
  0x46   :  { %499 = vrcp.f32 %v59_v52  ;;  %v748_v11 = vrot.slane %v68_v51, %v266_v33  ;;  %v750_v13 = vrot.slane %v68_v51, %v270_v44  ;;  %v391_v16 = vmul.f32 %v740_v4, %v673_v15 }
  0x47   :  { %v246_v39 = vadd.f32 %v245_v31, %v244_v35  ;;  %v392_v14 = vmul.f32 %v742_v7, %v695_v28  ;;  %v399_v18 = vadd.f32 %v398_v2, %v397_v63  ;;  %v400_v19 = vsel %vm115_vm0, %v390_v1, 0.0 }
  0x48   :  { %v414_v21 = vmul.f32 %v748_v11, %v678_v17  ;;  %v420_v22 = vsel %vm115_vm0, %v412_v3, 0.0  ;;  %v421_v23 = vsel %vm115_vm0, %v413_v5, 0.0  ;;  %v761_v25 = vrot.slane %v68_v51, %v274_v45 }
  0x49   :  { %v248_v48 = vadd.f32 %v247_v37, %v246_v39  ;;  %v763_v26 = vrot.slane %v68_v51, %v278_v50  ;;  %v765_v27 = vrot.slane %v68_v51, %v282_v57  ;;  %v767_v29 = vrot.slane %v68_v51, %v286_v58 }
  0x4a   :  { %v771_v30 = vmul.f32 %v744_v8, %v690_v24  ;;  %v775_v31 = vmul.f32 %v746_v10, %v706_v34  ;;  %v415_v17 = vmul.f32 %v750_v13, %v683_v20  ;;  %v401_v35 = vadd.f32 %v400_v19, %v399_v18 }
  0x4b   :  { %v250_v56 = vadd.f32 %v249_v42, %v248_v48  ;;  %v402_v37 = vsel %vm115_vm0, %v391_v16, 0.0  ;;  %v781_v38 = vsel %vm115_vm0, %v392_v14, 0.0  ;;  %v422_v39 = vadd.f32 %v421_v23, %v420_v22 }
  0x4c   :  { %v423_v45 = vsel %vm115_vm0, %v414_v21, 0.0  ;;  %v416_v47 = vmul.f32 %v761_v25, %v673_v15  ;;  %v793_v48 = vmul.f32 %v763_v26, %v695_v28  ;;  %v425_v51 = vsel %vm115_vm0, %v415_v17, 0.0 }
  0x4d   :  { %v252_v62 = vadd.f32 %v251_v49, %v250_v56  ;;  %v424_v54 = vadd.f32 %v423_v45, %v422_v39  ;;  %v403_v14 = vadd.f32 %v402_v37, %v401_v35 }
  0x4e   :  { %v817_v19 = vsel %vm115_vm0, %v416_v47, 0.0 }
  0x4f   :  { %253 = vadd.xlane.f32.xlu1 %v252_v62  ;;  %v498_v33 = vpop.eup %497  ;;  %v814_v18 = vadd.f32 %v425_v51, %v424_v54 }
  0x50   :  { %v500_v40 = vpop.eup %499  ;;  %v69_v41 = vmul.f32 %v498_v33, %v663_v9  ;;  %v135_v42 = vcombine.high %v498_v33, %v498_v33  ;;  %v785_v44 = vrot.slane %v498_v33, %v661_v6 }
  0x51   :  { %v70_v46 = vmul.f32 %v500_v40, %v665_v12  ;;  %v152_v20 = vcombine.high %v500_v40, %v500_v40  ;;  %v800_v12 = vrot.slane %v500_v40, %v661_v6 }
  0x52   :  { %v73_v49 = vcombine.high %v69_v41, %v69_v41  ;;  %v80_v50 = vrot.slane %v69_v41, %v661_v6  ;;  %v149_v9 = vrot.slane %v135_v42, %v661_v6  ;;  %v150_v56 = vcombine.high %v785_v44, %v785_v44 }
  0x53   :  { %v90_v52 = vcombine.high %v70_v46, %v70_v46  ;;  %v97_v53 = vrot.slane %v70_v46, %v661_v6  ;;  %v808_v63 = vrot.slane %v152_v20, %v661_v6  ;;  %v177_v5 = vsel %vm115_vm0, %v785_v44, 0.0 }
  0x54   :  { %v87_v15 = vrot.slane %v73_v49, %v661_v6  ;;  %v88_v55 = vcombine.high %v80_v50, %v80_v50  ;;  %v116_v28 = vsel %vm115_vm0, %v80_v50, 0.0  ;;  %v151_v62 = vcombine.high %v149_v9, %v149_v9 }
  0x55   :  { %v104_v57 = vrot.slane %v90_v52, %v661_v6  ;;  %v105_v58 = vcombine.high %v97_v53, %v97_v53  ;;  %v178_v6 = vsel %vm115_vm0, %v150_v56, 0.0  ;;  %v180_v23 = vsel %vm115_vm0, %v149_v9, 0.0 }
  0x56   :  { %v89_v1 = vcombine.high %v87_v15, %v87_v15  ;;  %v117_v2 = vsel %vm115_vm0, %v88_v55, 0.0  ;;  %v119_v3 = vsel %vm115_vm0, %v87_v15, 0.0  ;;  %v123_v33 = vsel %vm115_vm0, %v97_v53, 0.0 }
  0x57   :  { %v118_v16 = vadd.f32 %v117_v2, %v116_v28  ;;  %v106_v21 = vcombine.high %v104_v57, %v104_v57  ;;  %v167_v39 = vcombine.high %v800_v12, %v800_v12  ;;  %v179_v40 = vadd.f32 %v178_v6, %v177_v5 }
  0x58   :  { %v121_v22 = vsel %vm115_vm0, %v89_v1, 0.0  ;;  %v125_v35 = vsel %vm115_vm0, %v105_v58, 0.0  ;;  %v828_v37 = vcombine.high %v808_v63, %v808_v63  ;;  %v182_v41 = vsel %vm115_vm0, %v151_v62, 0.0 }
  0x59   :  { %v120_v17 = vadd.f32 %v119_v3, %v118_v16  ;;  %v296_v42 = vmul.f32 %v701_v32, %v785_v44  ;;  %v181_v46 = vadd.f32 %v180_v23, %v179_v40  ;;  %v297_v20 = vmul.f32 %v708_v36, %v150_v56 }
  0x5a   :  { %v298_v47 = vmul.f32 %v716_v43, %v149_v9  ;;  %v127_v49 = vsel %vm115_vm0, %v104_v57, 0.0  ;;  %v129_v50 = vsel %vm115_vm0, %v106_v21, 0.0  ;;  %v184_v51 = vsel %vm115_vm0, %v800_v12, 0.0 }
  0x5b   :  { %v122_v45 = vadd.f32 %v121_v22, %v120_v17  ;;  %v299_v52 = vmul.f32 %v729_v59, %v151_v62  ;;  %v183_v54 = vadd.f32 %v182_v41, %v181_v46  ;;  %v186_v15 = vsel %vm115_vm0, %v167_v39, 0.0 }
  0x5c   :  { %v304_v32 = vsel %vm115_vm0, %v296_v42, 0.0  ;;  %v188_v36 = vsel %vm115_vm0, %v808_v63, 0.0  ;;  %v300_v43 = vmul.f32 %v740_v4, %v800_v12  ;;  %v305_v55 = vsel %vm115_vm0, %v297_v20, 0.0 }
  0x5d   :  { %v124_v53 = vadd.f32 %v123_v33, %v122_v45  ;;  %v307_v28 = vsel %vm115_vm0, %v298_v47, 0.0  ;;  %v185_v58 = vadd.f32 %v184_v51, %v183_v54  ;;  %v301_v59 = vmul.f32 %v742_v7, %v167_v39 }
  0x5e   :  { %v306_v1 = vadd.f32 %v305_v55, %v304_v32  ;;  %v190_v2 = vsel %vm115_vm0, %v828_v37, 0.0  ;;  %v309_v3 = vsel %vm115_vm0, %v299_v52, 0.0  ;;  %v362_v5 = vmul.f32 %v731_v60, %v785_v44 }
  0x5f   :  { %v126_v57 = vadd.f32 %v125_v35, %v124_v53  ;;  %v363_v16 = vmul.f32 %v733_v61, %v150_v56  ;;  %v187_v21 = vadd.f32 %v186_v15, %v185_v58  ;;  %v364_v6 = vmul.f32 %v748_v11, %v149_v9 }
  0x60   :  { %v308_v22 = vadd.f32 %v307_v28, %v306_v1  ;;  %v302_v23 = vmul.f32 %v744_v8, %v808_v63  ;;  %v303_v7 = vmul.f32 %v746_v10, %v828_v37  ;;  %v311_v17 = vsel %vm115_vm0, %v300_v43, 0.0 }
  0x61   :  { %v128_v4 = vadd.f32 %v127_v49, %v126_v57  ;;  %v365_v33 = vmul.f32 %v750_v13, %v151_v62  ;;  %v189_v35 = vadd.f32 %v188_v36, %v187_v21  ;;  %v313_v61 = vsel %vm115_vm0, %v301_v59, 0.0 }
  0x62   :  { %v310_v60 = vadd.f32 %v309_v3, %v308_v22  ;;  %v366_v44 = vmul.f32 %v761_v25, %v800_v12  ;;  %v370_v11 = vsel %vm115_vm0, %v362_v5, 0.0  ;;  %v371_v9 = vsel %vm115_vm0, %v363_v16, 0.0 }
  0x63   :  { %v130_v40 = vadd.f32 %v129_v50, %v128_v4  ;;  %v373_v8 = vsel %vm115_vm0, %v364_v6, 0.0  ;;  %v191_v10 = vadd.f32 %v190_v2, %v189_v35  ;;  %v372_v41 = vadd.f32 %v371_v9, %v370_v11 }
  0x64   :  { %v312_v56 = vadd.f32 %v311_v17, %v310_v60  ;;  %v405_v13 = vadd.f32 %v781_v38, %v403_v14  ;;  %v315_v62 = vsel %vm115_vm0, %v302_v23, 0.0  ;;  %v367_v42 = vmul.f32 %v763_v26, %v167_v39 }
  0x65   :  { %131 = vadd.xlane.f32.xlu0 %v130_v40  ;;  %v375_v45 = vsel %vm115_vm0, %v365_v33, 0.0  ;;  %v406_v25 = vsel %vm115_vm0, %v771_v30, 0.0  ;;  %v374_v46 = vadd.f32 %v373_v8, %v372_v41  ;;  %v418_v20 = vmul.f32 %v765_v27, %v690_v24  ;;  %v464_v33 = vld [vmem:[#allocation8] sm:$0x3] }
  0x66   :  { %v314_v12 = vadd.f32 %v313_v61, %v312_v56  ;;  %v428_v47 = vadd.f32 %v817_v19, %v814_v18  ;;  %v317_v49 = vsel %vm115_vm0, %v303_v7, 0.0  ;;  %v368_v38 = vmul.f32 %v765_v27, %v808_v63 }
  0x67   :  { %v377_v26 = vsel %vm115_vm0, %v366_v44, 0.0  ;;  %v429_v14 = vsel %vm115_vm0, %v793_v48, 0.0  ;;  %v376_v39 = vadd.f32 %v375_v45, %v374_v46  ;;  %v407_v50 = vadd.f32 %v406_v25, %v405_v13 }
  0x68   :  { %v316_v30 = vadd.f32 %v315_v62, %v314_v12  ;;  %v369_v24 = vmul.f32 %v767_v29, %v828_v37  ;;  %v379_v51 = vsel %vm115_vm0, %v367_v42, 0.0  ;;  %v408_v18 = vsel %vm115_vm0, %v775_v31, 0.0 }
  0x69   :  { %192 = vadd.xlane.f32.xlu0 %v191_v10  ;;  %v378_v52 = vadd.f32 %v377_v26, %v376_v39  ;;  %v430_v27 = vadd.f32 %v429_v14, %v428_v47  ;;  %v381_v63 = vsel %vm115_vm0, %v368_v38, 0.0  ;;  %v419_v48 = vmul.f32 %v767_v29, %v706_v34 }
  0x6a   :  { %v318_v19 = vadd.f32 %v317_v49, %v316_v30  ;;  %v431_v53 = vsel %vm115_vm0, %v418_v20, 0.0  ;;  %v409_v15 = vadd.f32 %v408_v18, %v407_v50  ;;  %v383_v37 = vsel %vm115_vm0, %v369_v24, 0.0 }
  0x6b   :  { %v380_v54 = vadd.f32 %v379_v51, %v378_v52  ;;  %v432_v36 = vadd.f32 %v431_v53, %v430_v27  ;;  %v433_v43 = vsel %vm115_vm0, %v419_v48, 0.0  ;;  %v438_v28 = vand.u32 127, %v77_v0 }
  0x6c   :  { %319 = vadd.xlane.f32.xlu1 %v318_v19 }
  0x6d   :  { %v382_v32 = vadd.f32 %v381_v63, %v380_v54  ;;  %v434_v55 = vadd.f32 %v433_v43, %v432_v36  ;;  %vm439_vm1 = vcmp.eq.s32.totalorder %v438_v28, 0  ;;  %vm441_vm2 = vcmp.eq.s32.totalorder %v438_v28, 1 }
  0x6e   :  { %vm444_vm3 = vcmp.eq.s32.totalorder %v438_v28, 2  ;;  %vm447_vm4 = vcmp.eq.s32.totalorder %v438_v28, 3  ;;  %vm450_vm5 = vcmp.eq.s32.totalorder %v438_v28, 4  ;;  %vm453_vm6 = vcmp.eq.s32.totalorder %v438_v28, 5 }
  0x6f   :  { %v384_v31 = vadd.f32 %v383_v37, %v382_v32  ;;  %vm456_vm7 = vcmp.eq.s32.totalorder %v438_v28, 6 }
  0x70   :  { %410 = vadd.xlane.f32.xlu1 %v409_v15 }
  0x71   :  { %385 = vadd.xlane.f32.xlu0 %v384_v31 }
  0x75   :  { %435 = vadd.xlane.f32.xlu0 %v434_v55 }
  0xdc   :  { %v254_v34 = vpop.xlane.xlu1 %253 }
  0xdd   :  { %v445_v2 = vsel %vm444_vm3, %v254_v34, 0.0 }
  0xf2   :  { %v132_v57 = vpop.xlane.xlu0 %131 }
  0xf3   :  { %v440_v58 = vsel %vm439_vm1, %v132_v57, 0.0 }
  0xf6   :  { %v193_v29 = vpop.xlane.xlu0 %192 }
  0xf7   :  { %v442_v59 = vsel %vm441_vm2, %v193_v29, 0.0 }
  0xf8   :  { %v443_v1 = vadd.f32 %v442_v59, %v440_v58 }
  0xf9   :  { %v320_v3 = vpop.xlane.xlu1 %319 }
  0xfa   :  { %v446_v5 = vadd.f32 %v445_v2, %v443_v1  ;;  %v448_v16 = vsel %vm447_vm4, %v320_v3, 0.0 }
  0xfc   :  { %v449_v4 = vadd.f32 %v448_v16, %v446_v5 }
  0xfd   :  { %v411_v21 = vpop.xlane.xlu1 %410 }
  0xfe   :  { %v386_v22 = vpop.xlane.xlu0 %385  ;;  %v454_v6 = vsel %vm453_vm6, %v411_v21, 0.0 }
  0xff   :  { %v451_v0 = vsel %vm450_vm5, %v386_v22, 0.0 }
 0x100   :  { %v452_v23 = vadd.f32 %v451_v0, %v449_v4 }
 0x102   :  { %v455_v7 = vadd.f32 %v454_v6, %v452_v23  ;;  %v436_v17 = vpop.xlane.xlu0 %435 }
 0x103   :  { %v457_v40 = vsel %vm456_vm7, %v436_v17, 0.0 }
 0x104   :  { %v458_v35 = vadd.f32 %v457_v40, %v455_v7 }
 0x106   :  { %v465_v60 = vadd.f32 %v464_v33, %v458_v35 }
 0x108   :  { %466 = vst [vmem:[#allocation8] sm:$0x3] %v465_v60 }
 0x109   :  { %578 = shalt.err (!%p575_p0)
}
 0x10a   :  { %s579_s23 = scalar_lea.hbm %s911_s3, 32 }
 0x10b   :  { %p580_p1 = scmp.ne.s32.totalorder %s911_s3, %s579_s23  ;;  %p583_p2 = scmp.lt.u32.totalorder %s579_s23, %s911_s3 }
 0x10d   :  { %p585_p3 = pnand %p583_p2, %p580_p1 }
 0x10f   :  { %588 = shalt.err (!%p585_p3)
}
 0x110   :  { %476 = dma.vmem_to_hbm [thread:$0]  %s474_s19, 32, %s911_s3, [#allocation4]  }
 0x111   :  { %593 = dma.done.wait [#allocation4], 32  }
 0x112   :  { %594 = vsyncadd [#allocation4], 4294967264 }
 0x113   :  { %480 = vsyncpa [#allocation3], 1 }
 0x114   :  { %481 = vsyncpa [#allocation6], 1 }
 0x115   :  { %482 = vsyncpa [#allocation4], 1 }

</bundles_post_ra>
